<compile_context>
chip_gen: v6e
topology: v6e:2x2x1
jax: 0.10.0
libtpu: 0.0.40
codegen_flags: <defaults>
</compile_context>

<pallas_src>
import numpy as np
import jax
import jax.numpy as jnp
from jax.experimental import pallas as pl
from jax.experimental.pallas import tpu as pltpu


# ----------------------------------------------------------------------------
# shared per-layer math (batch folded into the lane dimension)
# ----------------------------------------------------------------------------
def _nbf_layer_step(x, boundary, a2_bf, rel_flat, w1bd, w2bd, bias, gamma, beta,
                    mask_mean):
    """One GeneralizedRelationalConv layer (distmult msg, sum agg, Linear, LN, ReLU, residual).

    x, boundary : [N, B*D]   f32   (batch folded into lanes)
    a2_bf       : [N, R*N]   bf16  (A2[v, r*N+u] = A[r, v, u])
    rel_flat    : [R, B*D]   f32   (rel_flat[r, b*D+d] = rel[b, r, d])
    w1bd, w2bd  : [B*D, B*D] bf16  (block-diagonal over batch)
    bias/gamma/beta : [1, B*D] f32 (tiled over batch)
    mask_mean   : [B*D, B*D] f32   (per-batch-block averaging mask, entries 1/D)
    """
    N, BD = x.shape
    R = rel_flat.shape[0]

    # distmult message for every relation & batch, then ONE aggregation matmul:
    #   agg[v, b*D+d] = boundary + sum_{r,u} A[r, v, u] * x[b, u, d] * rel[b, r, d]
    msg = (x[None, :, :] * rel_flat[:, None, :]).reshape(R * N, BD)
    agg = boundary + jnp.dot(a2_bf, msg.astype(jnp.bfloat16),
                             preferred_element_type=jnp.float32)

    # Linear(cat([input, agg])) == x @ W1 + agg @ W2 + b; block-diag weights keep
    # the batch-in-lanes layout and give 128-wide MXU operands.
    lin = (jnp.dot(x.astype(jnp.bfloat16), w1bd, preferred_element_type=jnp.float32)
           + jnp.dot(agg.astype(jnp.bfloat16), w2bd, preferred_element_type=jnp.float32)
           + bias)

    # LayerNorm (eps=1e-5, affine) over each batch's D-block of lanes.
    # Stats via f32 block-mask matmuls -> no lane/sublane reshuffles.
    mu = jnp.dot(lin, mask_mean, preferred_element_type=jnp.float32)
    cen = lin - mu
    var = jnp.dot(cen * cen, mask_mean, preferred_element_type=jnp.float32)
    normed = cen * jax.lax.rsqrt(var + 1e-5) * gamma + beta
    act = jnp.maximum(normed, 0.0)
    return act + x                      # short_cut residual (hidden dims all equal)


# ----------------------------------------------------------------------------
# Pallas kernel 1: fused L-layer NBFNet (relation graph)
#   carried layer state lives in o_ref (output resident across the grid axis).
# ----------------------------------------------------------------------------
def _nbf_fused_kernel(a2_ref, bd_ref, relL_ref, w1L_ref, w2L_ref, bL_ref,
                      gL_ref, beL_ref, mask_ref, o_ref):
    l = pl.program_id(0)

    @pl.when(l == 0)
    def _():
        o_ref[...] = bd_ref[...]        # x starts as the boundary condition

    o_ref[...] = _nbf_layer_step(o_ref[...], bd_ref[...], a2_ref[...], relL_ref[0],
                                 w1L_ref[0], w2L_ref[0], bL_ref[0], gL_ref[0],
                                 beL_ref[0], mask_ref[...])


# ----------------------------------------------------------------------------
# Pallas kernel 2: fused L-layer NBFNet + shared MLP heads (entity graph)
#   mlp_embedd = Linear(F,F) + ReLU     (F = 2D, applied to cat([x, node_query]))
#   mlp_score  = same shared Linear+ReLU then Linear(F,1)
#   score output is lane-padded to 128 so the final HBM store stays lane-dense.
# ----------------------------------------------------------------------------
def _entity_fused_kernel(a2_ref, bd_ref, relL_ref, w1L_ref, w2L_ref, bL_ref,
                         gL_ref, beL_ref, mask_ref, wtop_ref, hb_ref, ws_ref,
                         e_ref, s_ref, x_scr):
    l = pl.program_id(0)

    @pl.when(l == 0)
    def _():
        x_scr[...] = bd_ref[...]

    new_x = _nbf_layer_step(x_scr[...], bd_ref[...], a2_ref[...], relL_ref[0],
                            w1L_ref[0], w2L_ref[0], bL_ref[0], gL_ref[0],
                            beL_ref[0], mask_ref[...])
    x_scr[...] = new_x

    @pl.when(l == pl.num_programs(0) - 1)
    def _():
        # h = ReLU(cat([x, node_query]) @ W + b)
        #   = ReLU(x @ W_top (block-diag) + (q @ W_bot + b) folded into a bias)
        h = jnp.maximum(
            jnp.dot(new_x.astype(jnp.bfloat16), wtop_ref[...],
                    preferred_element_type=jnp.float32) + hb_ref[...], 0.0)
        e_ref[...] = h                                        # [N, B*F] lane-dense
        # score head: [N, B*F] @ lane-padded block-diag(score_w) -> [N, 128]
        s_ref[...] = jnp.dot(h, ws_ref[...], preferred_element_type=jnp.float32)


# ----------------------------------------------------------------------------
# wrapper-side layout helpers (one-time packing, reused every layer/batch)
# ----------------------------------------------------------------------------
def _block_diag(mat, B):
    return jnp.kron(jnp.eye(B, dtype=mat.dtype), mat)


def _mean_mask(B, D):
    return jnp.kron(jnp.eye(B, dtype=jnp.float32),
                    jnp.ones((D, D), jnp.float32)) / D


def _fold_lanes(x_bnd):
    # [B, N, D] -> [N, B*D]
    B, N, D = x_bnd.shape
    return x_bnd.transpose(1, 0, 2).reshape(N, B * D)


def _unfold_lanes(x_nbd, B, D):
    # [N, B*D] -> [B, N, D]
    N = x_nbd.shape[0]
    return x_nbd.reshape(N, B, D).transpose(1, 0, 2)


def _round_up(x, m):
    return ((x + m - 1) // m) * m


# ----------------------------------------------------------------------------
# Parameter init (deterministic, synthetic)
# ----------------------------------------------------------------------------
def init_params(key, D, n_ent_rel, n_meta_rel, num_layers=6):
    F = 2 * D  # feature_dim = hidden_dims[-1] + input_dim
    keys = iter(jax.random.split(key, 200))
    nrm = lambda shape, s=0.1: (s * jax.random.normal(next(keys), shape)).astype(jnp.float32)

    params = {"rel_layers": [], "ent_layers": []}
    # RelNBFNet: num_layers layers over the relation graph (n_meta_rel meta-relations)
    for _ in range(num_layers):
        params["rel_layers"].append(dict(
            rel_emb=nrm((n_meta_rel, D)),
            w1=nrm((D, D)), w2=nrm((D, D)), b=jnp.zeros((1, D), jnp.float32),
            gamma=jnp.ones((1, D), jnp.float32), beta=jnp.zeros((1, D), jnp.float32)))
    params["rel_query"] = nrm((D,))  # nn.Embedding(1, input_dim) of RelNBFNet

    # EntityNBFNet: num_layers layers, project_relations=True (2-layer relation MLP)
    for _ in range(num_layers):
        params["ent_layers"].append(dict(
            p1=nrm((D, D)), pb1=jnp.zeros((D,), jnp.float32),
            p2=nrm((D, D)), pb2=jnp.zeros((D,), jnp.float32),
            w1=nrm((D, D)), w2=nrm((D, D)), b=jnp.zeros((1, D), jnp.float32),
            gamma=jnp.ones((1, D), jnp.float32), beta=jnp.zeros((1, D), jnp.float32)))

    # shared MLP (num_mlp_layers=2): one Linear(F,F)+ReLU shared by embedd & score,
    # plus Linear(F,1) for the score head (get_scores=True)
    params["mlp_w"] = nrm((F, F))
    params["mlp_b"] = jnp.zeros((1, F), jnp.float32)
    params["score_w"] = nrm((F, 1))
    params["score_b"] = jnp.zeros((1, 1), jnp.float32)
    return params


# ----------------------------------------------------------------------------
# Model forwards (glue + fused kernel calls)
# ----------------------------------------------------------------------------
@jax.jit
def rel_model_forward(adj_rel, query_rels, params):
    """RelNBFNet: L-layer Bellman-Ford over the relation graph -> [B, n_ent_rel, D]."""
    B = query_rels.shape[0]
    R, Nr, _ = adj_rel.shape
    D = params["rel_query"].shape[0]
    BD = B * D
    L = len(params["rel_layers"])

    query = jnp.broadcast_to(params["rel_query"][None, :], (B, D))
    boundary = jnp.zeros((B, Nr, D), jnp.float32).at[jnp.arange(B), query_rels].set(query)
    boundary_l = _fold_lanes(boundary)

    a2 = adj_rel.transpose(1, 0, 2).reshape(Nr, R * Nr).astype(jnp.bfloat16)
    mask_mean = _mean_mask(B, D)

    rel_L = jnp.stack([jnp.tile(layer["rel_emb"], (1, B)) for layer in params["rel_layers"]])
    w1_L = jnp.stack([_block_diag(layer["w1"], B) for layer in params["rel_layers"]]).astype(jnp.bfloat16)
    w2_L = jnp.stack([_block_diag(layer["w2"], B) for layer in params["rel_layers"]]).astype(jnp.bfloat16)
    b_L = jnp.stack([jnp.tile(layer["b"], (1, B)) for layer in params["rel_layers"]])
    g_L = jnp.stack([jnp.tile(layer["gamma"], (1, B)) for layer in params["rel_layers"]])
    be_L = jnp.stack([jnp.tile(layer["beta"], (1, B)) for layer in params["rel_layers"]])

    x_out = pl.pallas_call(
        _nbf_fused_kernel,
        out_shape=jax.ShapeDtypeStruct((Nr, BD), jnp.float32),
        grid_spec=pltpu.PrefetchScalarGridSpec(
            num_scalar_prefetch=0,
            grid=(L,),
            in_specs=[
                pl.BlockSpec((Nr, R * Nr), lambda l: (0, 0)),   # A2 (resident)
                pl.BlockSpec((Nr, BD), lambda l: (0, 0)),       # boundary (resident)
                pl.BlockSpec((1, R, BD), lambda l: (l, 0, 0)),  # per-layer relations
                pl.BlockSpec((1, BD, BD), lambda l: (l, 0, 0)), # per-layer W1 (block-diag)
                pl.BlockSpec((1, BD, BD), lambda l: (l, 0, 0)), # per-layer W2 (block-diag)
                pl.BlockSpec((1, 1, BD), lambda l: (l, 0, 0)),  # bias
                pl.BlockSpec((1, 1, BD), lambda l: (l, 0, 0)),  # LN gamma
                pl.BlockSpec((1, 1, BD), lambda l: (l, 0, 0)),  # LN beta
                pl.BlockSpec((BD, BD), lambda l: (0, 0)),       # LN block mask
            ],
            out_specs=pl.BlockSpec((Nr, BD), lambda l: (0, 0)),  # carried layer state
        ),
        compiler_params=pltpu.CompilerParams(dimension_semantics=("arbitrary",)),
    )(a2, boundary_l, rel_L, w1_L, w2_L, b_L, g_L, be_L, mask_mean)

    return _unfold_lanes(x_out, B, D)                           # [B, Nr, D]


@jax.jit
def entity_model_forward(adj_ent, rel_repr, h_index, r_index, params):
    """EntityNBFNet.bellmanford + shared MLP heads (fused into one pallas_call)."""
    B, R_rel, D = rel_repr.shape
    R, N, _ = adj_ent.shape
    BD = B * D
    F = 2 * D
    BF = B * F
    SPAD = _round_up(max(B, 128), 128)   # lane-padded score width (lane-dense store)
    L = len(params["ent_layers"])

    query = rel_repr[jnp.arange(B), r_index]                    # [B, D]
    boundary = jnp.zeros((B, N, D), jnp.float32).at[jnp.arange(B), h_index].set(query)
    boundary_l = _fold_lanes(boundary)

    a2 = adj_ent.transpose(1, 0, 2).reshape(N, R * N).astype(jnp.bfloat16)
    mask_mean = _mean_mask(B, D)

    # project_relations=True: per-layer 2-layer MLP on the relation reps (tiny, XLA glue)
    rel_L, w1_L, w2_L, b_L, g_L, be_L = [], [], [], [], [], []
    for layer in params["ent_layers"]:
        h = jnp.maximum(jnp.einsum("brd,de->bre", rel_repr, layer["p1"]) + layer["pb1"], 0.0)
        rel_l = jnp.einsum("brd,de->bre", h, layer["p2"]) + layer["pb2"]   # [B, R, D]
        rel_L.append(rel_l.transpose(1, 0, 2).reshape(R, BD))
        w1_L.append(_block_diag(layer["w1"], B))
        w2_L.append(_block_diag(layer["w2"], B))
        b_L.append(jnp.tile(layer["b"], (1, B)))
        g_L.append(jnp.tile(layer["gamma"], (1, B)))
        be_L.append(jnp.tile(layer["beta"], (1, B)))
    rel_L = jnp.stack(rel_L)
    w1_L = jnp.stack(w1_L).astype(jnp.bfloat16)
    w2_L = jnp.stack(w2_L).astype(jnp.bfloat16)
    b_L, g_L, be_L = jnp.stack(b_L), jnp.stack(g_L), jnp.stack(be_L)

    # shared MLP head packing: cat([x, node_query]) @ W  ==  x @ W_top + q @ W_bot
    w_top = params["mlp_w"][:D]                                  # [D, F]
    w_bot = params["mlp_w"][D:]                                  # [D, F]
    wtop_bd = _block_diag(w_top, B).astype(jnp.bfloat16)         # [B*D, B*F]
    head_bias = (query @ w_bot + params["mlp_b"]).reshape(1, BF) # per-batch bias row
    ws_blk = jnp.kron(jnp.eye(B, dtype=jnp.float32), params["score_w"])  # [B*F, B]
    ws_pad = jnp.zeros((BF, SPAD), jnp.float32).at[:, :B].set(ws_blk)    # lane-padded

    embedd_l, scores_pad = pl.pallas_call(
        _entity_fused_kernel,
        out_shape=(jax.ShapeDtypeStruct((N, BF), jnp.float32),
                   jax.ShapeDtypeStruct((N, SPAD), jnp.float32)),
        grid_spec=pltpu.PrefetchScalarGridSpec(
            num_scalar_prefetch=0,
            grid=(L,),
            in_specs=[
                pl.BlockSpec((N, R * N), lambda l: (0, 0)),      # A2 (resident)
                pl.BlockSpec((N, BD), lambda l: (0, 0)),         # boundary (resident)
                pl.BlockSpec((1, R, BD), lambda l: (l, 0, 0)),   # per-layer relations
                pl.BlockSpec((1, BD, BD), lambda l: (l, 0, 0)),  # per-layer W1
                pl.BlockSpec((1, BD, BD), lambda l: (l, 0, 0)),  # per-layer W2
                pl.BlockSpec((1, 1, BD), lambda l: (l, 0, 0)),   # bias
                pl.BlockSpec((1, 1, BD), lambda l: (l, 0, 0)),   # LN gamma
                pl.BlockSpec((1, 1, BD), lambda l: (l, 0, 0)),   # LN beta
                pl.BlockSpec((BD, BD), lambda l: (0, 0)),        # LN block mask
                pl.BlockSpec((BD, BF), lambda l: (0, 0)),        # W_top (block-diag)
                pl.BlockSpec((1, BF), lambda l: (0, 0)),         # head bias (q@W_bot + b)
                pl.BlockSpec((BF, SPAD), lambda l: (0, 0)),      # score weight (padded)
            ],
            out_specs=[pl.BlockSpec((N, BF), lambda l: (0, 0)),
                       pl.BlockSpec((N, SPAD), lambda l: (0, 0))],
            scratch_shapes=[pltpu.VMEM((N, BD), jnp.float32)],
        ),
        compiler_params=pltpu.CompilerParams(dimension_semantics=("arbitrary",)),
    )(a2, boundary_l, rel_L, w1_L, w2_L, b_L, g_L, be_L, mask_mean,
      wtop_bd, head_bias, ws_pad)

    embedd = embedd_l.reshape(N, B, F).transpose(1, 0, 2)        # [B, N, 2D]
    scores = scores_pad[:, :B].T[:, :, None] + params["score_b"][0, 0]   # [B, N, 1]
    return embedd, scores


def ultra_forward(adj_ent, adj_rel, batch_np, num_relations, params, atom_repr=False):
    # split_corruptions: our synthetic batch has a uniform corruption count -> one group
    batch_np = np.asarray(batch_np, dtype=np.int64)
    query_rels = jnp.asarray(batch_np[:, 0, 2], dtype=jnp.int32)
    rel_repr = rel_model_forward(adj_rel, query_rels, params)

    # split_head_tail_negatives: identity when each query's corruptions are all-tail
    # (or all-head). TODO(synk): the general ragged head/tail split is host-side
    # data-dependent control flow and is not kernelized.
    is_head = batch_np[:, 0, 0][:, None] == batch_np[:, :, 0]
    assert np.all(np.all(is_head, axis=1) | np.all(~is_head, axis=1))

    # negative_sample_to_tail is identity for tail-only corruptions.
    h_index = jnp.asarray(batch_np[:, 0, 0], dtype=jnp.int32)
    r_index = jnp.asarray(batch_np[:, 0, 2], dtype=jnp.int32)

    embedd, scores = entity_model_forward(adj_ent, rel_repr, h_index, r_index, params)

    if not atom_repr:
        rel_out = jnp.mean(rel_repr[:, num_relations // 2:, :], axis=0)
        ent_out = jnp.mean(embedd, axis=0)
        # TODO(synk): convert_to_domain / pytorch_to_tf need `data.fol` and TensorFlow;
        # we return the mean entity/relation representation arrays directly.
        return ent_out, rel_out, scores
    else:
        # TODO(synk): atom_repr gather path (feature.gather(1, t_index)) not exercised here.
        return embedd[:, :1, :], scores[:, :1, :]


# ----------------------------------------------------------------------------
# Synthetic graph / batch construction
# ----------------------------------------------------------------------------
def make_dense_adj(key, num_nodes, num_rel, num_edges):
    k1, k2, k3 = jax.random.split(key, 3)
    src = jax.random.randint(k1, (num_edges,), 0, num_nodes)
    dst = jax.random.randint(k2, (num_edges,), 0, num_nodes)
    typ = jax.random.randint(k3, (num_edges,), 0, num_rel)
    A = jnp.zeros((num_rel, num_nodes, num_nodes), jnp.float32)
    return A.at[typ, dst, src].add(1.0)


if __name__ == "__main__":
    D = 64          # input/hidden dim of both NBFNets
    N_ENT = 32      # entity-graph nodes
    N_REL = 8       # entity-graph relation types (4 direct + 4 inverse)
    N_META = 4      # relation-graph meta-relation types
    B = 2           # queries
    N_CORR = 4      # corruptions per query (tail corruptions)

    key = jax.random.PRNGKey(0)
    k_par, k_ge, k_gr = jax.random.split(key, 3)

    params = init_params(k_par, D, N_REL, N_META)
    adj_ent = make_dense_adj(k_ge, N_ENT, N_REL, num_edges=96)   # [N_REL, N_ENT, N_ENT]
    adj_rel = make_dense_adj(k_gr, N_REL, N_META, num_edges=24)  # [N_META, N_REL, N_REL]

    # batch[q, c] = (head, tail, relation); same head & relation per query => tail corruptions
    batch = np.zeros((B, N_CORR, 3), dtype=np.int64)
    batch[:, :, 0] = np.array([[3], [7]])
    batch[:, :, 2] = np.array([[1], [2]])
    batch[:, :, 1] = np.array([[5, 0, 9, 11], [2, 4, 6, 8]])

    ent_repr, rel_repr, scores = ultra_forward(adj_ent, adj_rel, batch, N_REL, params,
                                               atom_repr=False)
    jax.block_until_ready((ent_repr, rel_repr, scores))
    assert ent_repr.shape == (N_ENT, 2 * D)
    assert rel_repr.shape == (N_REL // 2, D)
    assert scores.shape == (B, N_ENT, 1)
    print("KERNEL_OK")
</pallas_src>

<mosaic_0001>
module attributes {stable_mosaic.version = 11 : i64} {
  func.func @_nbf_fused_kernel(%arg0: i32, %arg1: memref<8x32xbf16, #tpu.memory_space<vmem>>, %arg2: memref<8x128xf32, #tpu.memory_space<vmem>>, %arg3: memref<1x4x128xf32, #tpu.memory_space<vmem>>, %arg4: memref<1x128x128xbf16, #tpu.memory_space<vmem>>, %arg5: memref<1x128x128xbf16, #tpu.memory_space<vmem>>, %arg6: memref<1x1x128xf32, #tpu.memory_space<vmem>>, %arg7: memref<1x1x128xf32, #tpu.memory_space<vmem>>, %arg8: memref<1x1x128xf32, #tpu.memory_space<vmem>>, %arg9: memref<128x128xf32, #tpu.memory_space<vmem>>, %arg10: memref<8x128xf32, #tpu.memory_space<vmem>>) attributes {dimension_semantics = [#tpu.dimension_semantics<arbitrary>], iteration_bounds = array<i64: 6>, scalar_prefetch = 0 : i64, scratch_operands = 0 : i64, tpu.core_type = #tpu.core_type<tc>, window_params = [{pipeline_mode = #tpu.pipeline_mode<synchronous>, transform_indices = @transform_0, window_bounds = array<i64: 8, 32>}, {pipeline_mode = #tpu.pipeline_mode<synchronous>, transform_indices = @transform_1, window_bounds = array<i64: 8, 128>}, {transform_indices = @transform_2, window_bounds = array<i64: 1, 4, 128>}, {transform_indices = @transform_3, window_bounds = array<i64: 1, 128, 128>}, {transform_indices = @transform_4, window_bounds = array<i64: 1, 128, 128>}, {transform_indices = @transform_5, window_bounds = array<i64: 1, 1, 128>}, {transform_indices = @transform_6, window_bounds = array<i64: 1, 1, 128>}, {transform_indices = @transform_7, window_bounds = array<i64: 1, 1, 128>}, {pipeline_mode = #tpu.pipeline_mode<synchronous>, transform_indices = @transform_8, window_bounds = array<i64: 128, 128>}, {pipeline_mode = #tpu.pipeline_mode<synchronous>, transform_indices = @transform_9, window_bounds = array<i64: 8, 128>}]} {
    %c0_i32 = arith.constant 0 : i32
    %0 = arith.cmpi eq, %arg0, %c0_i32 : i32
    %1 = arith.extui %0 : i1 to i32
    %c0_i32_0 = arith.constant 0 : i32
    %2 = arith.cmpi ne, %1, %c0_i32_0 : i32
    scf.if %2 {
      %c0_34 = arith.constant 0 : index
      %c0_35 = arith.constant 0 : index
      %51 = vector.load %arg2[%c0_34, %c0_35] : memref<8x128xf32, #tpu.memory_space<vmem>>, vector<8x128xf32>
      %c0_36 = arith.constant 0 : index
      %c0_37 = arith.constant 0 : index
      %52 = vector.load %arg10[%c0_36, %c0_37] : memref<8x128xf32, #tpu.memory_space<vmem>>, vector<8x128xf32>
      tpu.vector_store %arg10[%c0_36, %c0_37], %51 {strides = array<i32>} : memref<8x128xf32, #tpu.memory_space<vmem>>, vector<8x128xf32>,
    } else {
    }
    %c0 = arith.constant 0 : index
    %c0_1 = arith.constant 0 : index
    %3 = vector.load %arg10[%c0, %c0_1] : memref<8x128xf32, #tpu.memory_space<vmem>>, vector<8x128xf32>
    %c0_2 = arith.constant 0 : index
    %c0_3 = arith.constant 0 : index
    %4 = vector.load %arg2[%c0_2, %c0_3] : memref<8x128xf32, #tpu.memory_space<vmem>>, vector<8x128xf32>
    %c0_4 = arith.constant 0 : index
    %c0_5 = arith.constant 0 : index
    %5 = vector.load %arg1[%c0_4, %c0_5] : memref<8x32xbf16, #tpu.memory_space<vmem>>, vector<8x32xbf16>
    %c0_6 = arith.constant 0 : index
    %c0_7 = arith.constant 0 : index
    %c0_8 = arith.constant 0 : index
    %6 = vector.load %arg3[%c0_6, %c0_7, %c0_8] : memref<1x4x128xf32, #tpu.memory_space<vmem>>, vector<1x4x128xf32>
    %7 = vector.shape_cast %6 : vector<1x4x128xf32> to vector<4x128xf32>
    %c0_9 = arith.constant 0 : index
    %c0_10 = arith.constant 0 : index
    %c0_11 = arith.constant 0 : index
    %8 = vector.load %arg4[%c0_9, %c0_10, %c0_11] : memref<1x128x128xbf16, #tpu.memory_space<vmem>>, vector<1x128x128xbf16>
    %9 = vector.shape_cast %8 : vector<1x128x128xbf16> to vector<128x128xbf16>
    %c0_12 = arith.constant 0 : index
    %c0_13 = arith.constant 0 : index
    %c0_14 = arith.constant 0 : index
    %10 = vector.load %arg5[%c0_12, %c0_13, %c0_14] : memref<1x128x128xbf16, #tpu.memory_space<vmem>>, vector<1x128x128xbf16>
    %11 = vector.shape_cast %10 : vector<1x128x128xbf16> to vector<128x128xbf16>
    %c0_15 = arith.constant 0 : index
    %c0_16 = arith.constant 0 : index
    %c0_17 = arith.constant 0 : index
    %12 = vector.load %arg6[%c0_15, %c0_16, %c0_17] : memref<1x1x128xf32, #tpu.memory_space<vmem>>, vector<1x1x128xf32>
    %13 = vector.shape_cast %12 : vector<1x1x128xf32> to vector<1x128xf32>
    %c0_18 = arith.constant 0 : index
    %c0_19 = arith.constant 0 : index
    %c0_20 = arith.constant 0 : index
    %14 = vector.load %arg7[%c0_18, %c0_19, %c0_20] : memref<1x1x128xf32, #tpu.memory_space<vmem>>, vector<1x1x128xf32>
    %15 = vector.shape_cast %14 : vector<1x1x128xf32> to vector<1x128xf32>
    %c0_21 = arith.constant 0 : index
    %c0_22 = arith.constant 0 : index
    %c0_23 = arith.constant 0 : index
    %16 = vector.load %arg8[%c0_21, %c0_22, %c0_23] : memref<1x1x128xf32, #tpu.memory_space<vmem>>, vector<1x1x128xf32>
    %17 = vector.shape_cast %16 : vector<1x1x128xf32> to vector<1x128xf32>
    %c0_24 = arith.constant 0 : index
    %c0_25 = arith.constant 0 : index
    %18 = vector.load %arg9[%c0_24, %c0_25] : memref<128x128xf32, #tpu.memory_space<vmem>>, vector<128x128xf32>
    %19 = vector.shape_cast %3 : vector<8x128xf32> to vector<1x8x128xf32>
    %20 = vector.shape_cast %7 : vector<4x128xf32> to vector<4x1x128xf32>
    %21 = vector.broadcast %19 : vector<1x8x128xf32> to vector<4x8x128xf32>
    %22 = vector.broadcast %20 : vector<4x1x128xf32> to vector<4x8x128xf32>
    %23 = arith.mulf %21, %22 : vector<4x8x128xf32>
    %24 = vector.shape_cast %23 : vector<4x8x128xf32> to vector<32x128xf32>
    %25 = arith.truncf %24 : vector<32x128xf32> to vector<32x128xbf16>
    %cst = arith.constant dense<0.000000e+00> : vector<8x128xf32>
    %26 = tpu.matmul %5, %25, %cst {dimension_numbers = #tpu.dot_dimension_numbers<[1], [0], [0], [1], [0, 0, 1, 1], [], []>} : vector<8x32xbf16>, vector<32x128xbf16>, vector<8x128xf32> -> vector<8x128xf32>
    %27 = arith.addf %4, %26 : vector<8x128xf32>
    %28 = arith.truncf %3 : vector<8x128xf32> to vector<8x128xbf16>
    %cst_26 = arith.constant dense<0.000000e+00> : vector<8x128xf32>
    %29 = tpu.matmul %28, %9, %cst_26 {dimension_numbers = #tpu.dot_dimension_numbers<[1], [0], [0], [1], [0, 0, 1, 1], [], []>} : vector<8x128xbf16>, vector<128x128xbf16>, vector<8x128xf32> -> vector<8x128xf32>
    %30 = arith.truncf %27 : vector<8x128xf32> to vector<8x128xbf16>
    %cst_27 = arith.constant dense<0.000000e+00> : vector<8x128xf32>
    %31 = tpu.matmul %30, %11, %cst_27 {dimension_numbers = #tpu.dot_dimension_numbers<[1], [0], [0], [1], [0, 0, 1, 1], [], []>} : vector<8x128xbf16>, vector<128x128xbf16>, vector<8x128xf32> -> vector<8x128xf32>
    %32 = arith.addf %29, %31 : vector<8x128xf32>
    %33 = vector.broadcast %13 : vector<1x128xf32> to vector<8x128xf32>
    %34 = arith.addf %32, %33 : vector<8x128xf32>
    %cst_28 = arith.constant dense<0.000000e+00> : vector<8x128xf32>
    %35 = tpu.matmul %34, %18, %cst_28 {dimension_numbers = #tpu.dot_dimension_numbers<[1], [0], [0], [1], [0, 0, 1, 1], [], []>} : vector<8x128xf32>, vector<128x128xf32>, vector<8x128xf32> -> vector<8x128xf32>
    %36 = arith.subf %34, %35 : vector<8x128xf32>
    %37 = arith.mulf %36, %36 : vector<8x128xf32>
    %cst_29 = arith.constant dense<0.000000e+00> : vector<8x128xf32>
    %38 = tpu.matmul %37, %18, %cst_29 {dimension_numbers = #tpu.dot_dimension_numbers<[1], [0], [0], [1], [0, 0, 1, 1], [], []>} : vector<8x128xf32>, vector<128x128xf32>, vector<8x128xf32> -> vector<8x128xf32>
    %cst_30 = arith.constant 9.99999974E-6 : f32
    %39 = vector.broadcast %cst_30 : f32 to vector<8x128xf32>
    %40 = arith.addf %38, %39 : vector<8x128xf32>
    %41 = math.rsqrt %40 : vector<8x128xf32>
    %42 = arith.mulf %36, %41 : vector<8x128xf32>
    %43 = vector.broadcast %15 : vector<1x128xf32> to vector<8x128xf32>
    %44 = arith.mulf %42, %43 : vector<8x128xf32>
    %45 = vector.broadcast %17 : vector<1x128xf32> to vector<8x128xf32>
    %46 = arith.addf %44, %45 : vector<8x128xf32>
    %cst_31 = arith.constant 0.000000e+00 : f32
    %47 = vector.broadcast %cst_31 : f32 to vector<8x128xf32>
    %48 = arith.maximumf %46, %47 : vector<8x128xf32>
    %49 = arith.addf %48, %3 : vector<8x128xf32>
    %c0_32 = arith.constant 0 : index
    %c0_33 = arith.constant 0 : index
    %50 = vector.load %arg10[%c0_32, %c0_33] : memref<8x128xf32, #tpu.memory_space<vmem>>, vector<8x128xf32>
    tpu.vector_store %arg10[%c0_32, %c0_33], %49 {strides = array<i32>} : memref<8x128xf32, #tpu.memory_space<vmem>>, vector<8x128xf32>,
    return
  }
  func.func @transform_0(%arg0: i32) -> (i32, i32) {
    %c0_i32 = arith.constant 0 : i32
    %c0_i32_0 = arith.constant 0 : i32
    %c0_i32_1 = arith.constant 0 : i32
    return %c0_i32, %c0_i32_0 : i32, i32
  }
  func.func @transform_1(%arg0: i32) -> (i32, i32) {
    %c0_i32 = arith.constant 0 : i32
    %c0_i32_0 = arith.constant 0 : i32
    %c0_i32_1 = arith.constant 0 : i32
    return %c0_i32, %c0_i32_0 : i32, i32
  }
  func.func @transform_2(%arg0: i32) -> (i32, i32, i32) {
    %c0_i32 = arith.constant 0 : i32
    %c0_i32_0 = arith.constant 0 : i32
    %c0_i32_1 = arith.constant 0 : i32
    return %arg0, %c0_i32, %c0_i32_0 : i32, i32, i32
  }
  func.func @transform_3(%arg0: i32) -> (i32, i32, i32) {
    %c0_i32 = arith.constant 0 : i32
    %c0_i32_0 = arith.constant 0 : i32
    %c0_i32_1 = arith.constant 0 : i32
    return %arg0, %c0_i32, %c0_i32_0 : i32, i32, i32
  }
  func.func @transform_4(%arg0: i32) -> (i32, i32, i32) {
    %c0_i32 = arith.constant 0 : i32
    %c0_i32_0 = arith.constant 0 : i32
    %c0_i32_1 = arith.constant 0 : i32
    return %arg0, %c0_i32, %c0_i32_0 : i32, i32, i32
  }
  func.func @transform_5(%arg0: i32) -> (i32, i32, i32) {
    %c0_i32 = arith.constant 0 : i32
    %c0_i32_0 = arith.constant 0 : i32
    %c0_i32_1 = arith.constant 0 : i32
    return %arg0, %c0_i32, %c0_i32_0 : i32, i32, i32
  }
  func.func @transform_6(%arg0: i32) -> (i32, i32, i32) {
    %c0_i32 = arith.constant 0 : i32
    %c0_i32_0 = arith.constant 0 : i32
    %c0_i32_1 = arith.constant 0 : i32
    return %arg0, %c0_i32, %c0_i32_0 : i32, i32, i32
  }
  func.func @transform_7(%arg0: i32) -> (i32, i32, i32) {
    %c0_i32 = arith.constant 0 : i32
    %c0_i32_0 = arith.constant 0 : i32
    %c0_i32_1 = arith.constant 0 : i32
    return %arg0, %c0_i32, %c0_i32_0 : i32, i32, i32
  }
  func.func @transform_8(%arg0: i32) -> (i32, i32) {
    %c0_i32 = arith.constant 0 : i32
    %c0_i32_0 = arith.constant 0 : i32
    %c0_i32_1 = arith.constant 0 : i32
    return %c0_i32, %c0_i32_0 : i32, i32
  }
  func.func @transform_9(%arg0: i32) -> (i32, i32) {
    %c0_i32 = arith.constant 0 : i32
    %c0_i32_0 = arith.constant 0 : i32
    %c0_i32_1 = arith.constant 0 : i32
    return %c0_i32, %c0_i32_0 : i32, i32
  }
}

</mosaic_0001>

<bundles_post_ra>
// kernel: rel_model_forward.1
= control target key start
LH: loop header
LB: loop body
LE: loop exit
PB: predicated region body
PF: predicated region fallthrough
CT: control target
= control target key end

     0   :  { %s1278_s30 = smov 0   ;;  %s1484_s0 = inlined_call_operand.vmem [shape: bf16[8,32], index: 0, kind: input, shape index: {}]   ;;  %s1485_s1 = inlined_call_operand.vmem [shape: f32[8,128], index: 1, kind: input, shape index: {}]   ;;  %s1486_s2 = inlined_call_operand.vmem [shape: f32[6,4,128], index: 2, kind: input, shape index: {}]   ;;  %s1487_s3 = inlined_call_operand.vmem [shape: bf16[6,128,128], index: 3, kind: input, shape index: {}]   ;;  %s1488_s4 = inlined_call_operand.vmem [shape: bf16[6,128,128], index: 4, kind: input, shape index: {}]   ;;  %s1489_s5 = inlined_call_operand.vmem [shape: f32[6,1,128], index: 5, kind: input, shape index: {}]   ;;  %s1490_s6 = inlined_call_operand.vmem [shape: f32[6,1,128], index: 6, kind: input, shape index: {}]   ;;  %s1491_s7 = inlined_call_operand.vmem [shape: f32[6,1,128], index: 7, kind: input, shape index: {}]   ;;  %s1492_s8 = inlined_call_operand.vmem [shape: f32[128,128], index: 8, kind: input, shape index: {}]   ;;  %s1493_s9 = inlined_call_operand.vmem [shape: f32[8,128], index: 9, kind: output, shape index: {}]  }
   0x1 LB: > { %s980_s10 = sadd.s32 4294967295, %s1223_s30   ;;  %p983_p0 = scmp.ge.s32.totalorder %s1223_s30, 1  ;;  %s1223_s30 = sphi %s1278_s30, %s19_s30  }
   0x2   : > { %p325_p1 = scmp.lt.s32.totalorder %s1223_s30, 7 }
   0x4   : > { %p326_p2 = pnand %p983_p0, %p325_p1 }
   0x5   : > { %p374_p3 = scmp.lt.s32.totalorder (!%p326_p2), %s980_s10, 5  ;;  %p989_p4 = scmp.ne.s32.totalorder (!%p326_p2), %s980_s10, 0 }
   0x6   : > { %329 = sbr.rel (%p326_p2) target bundleno = 855 (0x357), region = 56 }
   0xb   : > { %s1286_s11 = scalar_select %p374_p3, %s980_s10, 5 }
   0xc   : > { %401 = sbr.rel (%p989_p4) target bundleno = 19 (0x13), region = 60 }
   0xd   : > { %s984_s12 = sshll.u32 %s1286_s11, 2  ;;  %s1013_s13 = sshll.u32 %s1286_s11, 6 }
   0xe   : > { %s377_s16 = scalar_lea.vmem %s1486_s2, %s984_s12  ;;  %s1296_s19 = scalar_lea.vmem %s1487_s3, %s1013_s13 }
   0xf   : > { %s1301_s22 = scalar_lea.vmem %s1488_s4, %s1013_s13  ;;  %s390_s25 = scalar_lea.vmem %s1489_s5, %s1286_s11 }
  0x10   : > { %s393_s28 = scalar_lea.vmem %s1490_s6, %s1286_s11  ;;  %s396_s14 = scalar_lea.vmem %s1491_s7, %s1286_s11 }
  0x11   : > { %v402_v0 = vld [vmem:[%s1485_s1] sm:$0xff] }
  0x12   : > { %403 = vst [vmem:[%s1493_s9] sm:$0xff] %v402_v0 }
  0x13 PF: > { %v990_v1 = vld.sshfl [vmem:[%s377_s16] sm:$0x33 pattern:$0x75316420]  ;;  %v471_v2 = vlaneseq  ;;  %v1225_v3 = vmov 0.0   ;;  %vm1227_vm0 = vmmov 0  }
  0x14   : > { %1070 = vmatprep.subr.bf16.mxu0 %v1225_v3  ;;  %1078 = vmatprep.subr.bf16.mxu1 %v1225_v3  ;;  %v1226_v4 = vmov 1966171168   ;;  %v467_v7 = vcombine.high %v990_v1, %v990_v1  ;;  %v1201_v9 = vld [vmem:[%s1301_s22 + $0x38] sm:$0xff]   ;;  %v1203_v11 = vld [vmem:[%s1301_s22 + $0x30] sm:$0xff]   ;;  %v1205_v19 = vld [vmem:[%s1301_s22 + $0x28] sm:$0xff]   ;;  %vm510_vm1 = vcmask 261120  }
  0x15   : > { %v469_v5 = vunpack.c.l.s4 %v1226_v4  ;;  %v472_v6 = vshrl.u32 %v471_v2, 7  ;;  %1074 = vmatprep.mubr.msk.bf16.mxu0 %vm1227_vm0, %v1225_v3  ;;  %1094 = vmatprep.mubr.msk.bf16.mxu1 %vm1227_vm0, %v1225_v3  ;;  %v1207_v27 = vld [vmem:[%s1301_s22 + $0x20] sm:$0xff]   ;;  %v1209_v30 = vld [vmem:[%s1301_s22 + $0x18] sm:$0xff]   ;;  %v1211_v33 = vld [vmem:[%s1301_s22 + $0x10] sm:$0xff]  }
  0x16   : > { %1079 = vmatpush3.bf16.msra.mxu1 %v1201_v9  ;;  %v406_v31 = vld [vmem:[%s1484_s0] sm:$0xf]  ;;  %v1199_v32 = vld [vmem:[%s1296_s19 + $0x38] sm:$0xff]   ;;  %v1200_v34 = vld [vmem:[%s1296_s19 + $0x30] sm:$0xff]  }
  0x17   : > { %v470_v8 = vunpack.c.0.s8 %v469_v5  ;;  %1080 = vmatprep.subr.bf16.mxu1 %v1225_v3  ;;  %v486_v14 = vsub.s32 0, %v472_v6  ;;  %v1213_v35 = vld [vmem:[%s1301_s22 + $0x8] sm:$0xff]   ;;  %v1204_v37 = vld [vmem:[%s1296_s19 + $0x20] sm:$0xff]   ;;  %v1206_v38 = vld [vmem:[%s1296_s19 + $0x18] sm:$0xff]  }
  0x18   : > { %v1202_v36 = vld [vmem:[%s1296_s19 + $0x28] sm:$0xff]   ;;  %v1208_v39 = vld [vmem:[%s1296_s19 + $0x10] sm:$0xff]   ;;  %v1212_v41 = vld [vmem:[%s1296_s19] sm:$0xff]  }
  0x19   : > { %v473_v10 = vsub.s32 %v470_v8, %v472_v6  ;;  %v1334_v20 = vld [vmem:[%s1493_s9] sm:$0xff]  ;;  %v1210_v40 = vld [vmem:[%s1296_s19 + $0x8] sm:$0xff]   ;;  %v458_v44 = vld [vmem:[%s1492_s8 + $0x78] sm:$0xff] }
  0x1a   : > { %1081 = vmatpush3.bf16.msra.mxu1 %v1203_v11  ;;  %v555_v42 = vpack.c.bf16 %v1334_v20, %v1334_v20  ;;  %v1214_v43 = vld [vmem:[%s1301_s22] sm:$0xff]   ;;  %v457_v45 = vld [vmem:[%s1492_s8 + $0x70] sm:$0xff]  ;;  %v456_v46 = vld [vmem:[%s1492_s8 + $0x68] sm:$0xff] }
  0x1b   : > { %v474_v12 = vrot.slane %v990_v1, %v473_v10  ;;  %v481_v13 = vrot.slane %v467_v7, %v473_v10  ;;  %1082 = vmatprep.subr.bf16.mxu1 %v1225_v3  ;;  %v455_v47 = vld [vmem:[%s1492_s8 + $0x60] sm:$0xff]  ;;  %v454_v48 = vld [vmem:[%s1492_s8 + $0x58] sm:$0xff]  ;;  %v453_v49 = vld [vmem:[%s1492_s8 + $0x50] sm:$0xff] }
  0x1c   : > { %v452_v50 = vld [vmem:[%s1492_s8 + $0x48] sm:$0xff]  ;;  %v451_v51 = vld [vmem:[%s1492_s8 + $0x40] sm:$0xff]  ;;  %v450_v52 = vld [vmem:[%s1492_s8 + $0x38] sm:$0xff] }
  0x1d   : > { %v482_v15 = vcombine.high %v474_v12, %v474_v12  ;;  %v483_v16 = vcombine.high %v481_v13, %v481_v13  ;;  %v487_v17 = vrot.slane %v474_v12, %v486_v14  ;;  %v491_v18 = vrot.slane %v481_v13, %v486_v14  ;;  %v449_v53 = vld [vmem:[%s1492_s8 + $0x30] sm:$0xff]  ;;  %v448_v54 = vld [vmem:[%s1492_s8 + $0x28] sm:$0xff]  ;;  %v447_v55 = vld [vmem:[%s1492_s8 + $0x20] sm:$0xff] }
  0x1e   : > { %1083 = vmatpush3.bf16.msra.mxu1 %v1205_v19  ;;  %v446_v56 = vld [vmem:[%s1492_s8 + $0x18] sm:$0xff]  ;;  %v405_v57 = vld [vmem:[%s1485_s1] sm:$0xff]  ;;  %v445_v5 = vld [vmem:[%s1492_s8 + $0x10] sm:$0xff] }
  0x1f   : > { %v495_v21 = vrot.slane %v482_v15, %v486_v14  ;;  %v499_v22 = vrot.slane %v483_v16, %v486_v14  ;;  %v504_v25 = vmul.f32 %v487_v17, %v1334_v20  ;;  %v505_v26 = vmul.f32 %v491_v18, %v1334_v20  ;;  %1084 = vmatprep.subr.bf16.mxu1 %v1225_v3  ;;  %v444_v6 = vld [vmem:[%s1492_s8 + $0x8] sm:$0xff]  ;;  %v443_v7 = vld [vmem:[%s1492_s8] sm:$0xff] }
  0x20   : > { %v1008_v8 = vld [vmem:[%s390_s25] ss:$0 sm:$0xff] }
  0x21   : > { %v506_v23 = vmul.f32 %v495_v21, %v1334_v20  ;;  %v507_v24 = vmul.f32 %v499_v22, %v1334_v20  ;;  %v508_v29 = vpack.c.bf16 %v505_v26, %v504_v25  ;;  %v1010_v25 = vld [vmem:[%s396_s14] ss:$0 sm:$0xff] }
  0x22   : > { %1085 = vmatpush3.bf16.msra.mxu1 %v1207_v27 }
  0x23   : > { %v509_v28 = vpack.c.bf16 %v507_v24, %v506_v23  ;;  %1086 = vmatprep.subr.bf16.mxu1 %v1225_v3  ;;  %v1009_v23 = vld [vmem:[%s393_s28] ss:$0 sm:$0xff] }
  0x25   : > { %1071 = vmatpush3.bf16.msra.mxu0 %v509_v28 }
  0x26   : > { %1072 = vmatprep.subr.bf16.mxu0 %v1225_v3  ;;  %1087 = vmatpush3.bf16.msra.mxu1 %v1209_v30 }
  0x27   : > { %1088 = vmatprep.subr.bf16.mxu1 %v1225_v3 }
  0x29   : > { %1073 = vmatpush3.bf16.msra.mxu0 %v508_v29 }
  0x2a   : > { %1098 = vmatprep.subr.bf16.mxu0 %v1225_v3  ;;  %1089 = vmatpush3.bf16.msra.mxu1 %v1211_v33 }
  0x2b   : > { %1090 = vmatprep.subr.bf16.mxu1 %v1225_v3 }
  0x2c   : > { %1075 = vmatmul.mubr.msk.bf16.vlgmr.msra.gmra.mxu0 %vm510_vm1, %v406_v31 }
  0x2d   : > { %1099 = vmatpush3.bf16.msra.mxu0 %v1199_v32  ;;  %1114 = vmatprep.mubr.msk.bf16.mxu0 %vm1227_vm0, %v1225_v3 }
  0x2e   : > { %1100 = vmatprep.subr.bf16.mxu0 %v1225_v3  ;;  %1091 = vmatpush3.bf16.msra.mxu1 %v1213_v35 }
  0x2f   : > { %1092 = vmatprep.subr.bf16.mxu1 %v1225_v3 }
  0x31   : > { %1101 = vmatpush3.bf16.msra.mxu0 %v1200_v34 }
  0x32   : > { %1102 = vmatprep.subr.bf16.mxu0 %v1225_v3  ;;  %1093 = vmatpush3.bf16.msra.mxu1 %v1214_v43 }
  0x33   : > { %1118 = vmatprep.subr.mxu1 %v1225_v3 }
  0x35   : > { %1103 = vmatpush3.bf16.msra.mxu0 %v1202_v36 }
  0x36   : > { %1104 = vmatprep.subr.bf16.mxu0 %v1225_v3 }
  0x39   : > { %1105 = vmatpush3.bf16.msra.mxu0 %v1204_v37 }
  0x3a   : > { %1106 = vmatprep.subr.bf16.mxu0 %v1225_v3 }
  0x3d   : > { %1107 = vmatpush3.bf16.msra.mxu0 %v1206_v38 }
  0x3e   : > { %1108 = vmatprep.subr.bf16.mxu0 %v1225_v3 }
  0x41   : > { %1109 = vmatpush3.bf16.msra.mxu0 %v1208_v39 }
  0x42   : > { %1110 = vmatprep.subr.bf16.mxu0 %v1225_v3 }
  0x45   : > { %1111 = vmatpush3.bf16.msra.mxu0 %v1210_v40 }
  0x46   : > { %1112 = vmatprep.subr.bf16.mxu0 %v1225_v3 }
  0x49   : > { %1113 = vmatpush3.bf16.msra.mxu0 %v1212_v41 }
  0x4a   : > { %1153 = vmatprep.subr.mxu0 %v1225_v3 }
  0x4c   : > { %1115 = vmatmul.mubr.bf16.vlgmr.msra.gmra.mxu0 %v555_v42 }
  0x4d   : > { %1185 = vmatprep.mubr.msk.f32.mxu0 %vm1227_vm0, %v1225_v3  ;;  %1154 = vmatpush3.msra.mxu0 %v458_v44 }
  0x4e   : > { %1155 = vmatprep.subr.mxu0 %v1225_v3 }
  0x4f   : > { %1156 = vmatpush3.msra.mxu0 %v457_v45 }
  0x50   : > { %1157 = vmatprep.subr.mxu0 %v1225_v3 }
  0x51   : > { %1158 = vmatpush3.msra.mxu0 %v456_v46 }
  0x52   : > { %1159 = vmatprep.subr.mxu0 %v1225_v3 }
  0x53   : > { %1160 = vmatpush3.msra.mxu0 %v455_v47 }
  0x54   : > { %1161 = vmatprep.subr.mxu0 %v1225_v3 }
  0x55   : > { %1162 = vmatpush3.msra.mxu0 %v454_v48 }
  0x56   : > { %1163 = vmatprep.subr.mxu0 %v1225_v3 }
  0x57   : > { %1164 = vmatpush3.msra.mxu0 %v453_v49 }
  0x58   : > { %1165 = vmatprep.subr.mxu0 %v1225_v3 }
  0x59   : > { %1166 = vmatpush3.msra.mxu0 %v452_v50 }
  0x5a   : > { %1167 = vmatprep.subr.mxu0 %v1225_v3 }
  0x5b   : > { %1168 = vmatpush3.msra.mxu0 %v451_v51 }
  0x5c   : > { %1169 = vmatprep.subr.mxu0 %v1225_v3 }
  0x5d   : > { %1170 = vmatpush3.msra.mxu0 %v450_v52 }
  0x5e   : > { %1171 = vmatprep.subr.mxu0 %v1225_v3 }
  0x5f   : > { %1172 = vmatpush3.msra.mxu0 %v449_v53 }
  0x60   : > { %1173 = vmatprep.subr.mxu0 %v1225_v3 }
  0x61   : > { %1174 = vmatpush3.msra.mxu0 %v448_v54 }
  0x62   : > { %1175 = vmatprep.subr.mxu0 %v1225_v3 }
  0x63   : > { %1176 = vmatpush3.msra.mxu0 %v447_v55 }
  0x64   : > { %1177 = vmatprep.subr.mxu0 %v1225_v3 }
  0x65   : > { %1178 = vmatpush3.msra.mxu0 %v446_v56 }
  0x66   : > { %1179 = vmatprep.subr.mxu0 %v1225_v3 }
  0x67   : > { %1180 = vmatpush3.msra.mxu0 %v445_v5 }
  0x68   : > { %1181 = vmatprep.subr.mxu0 %v1225_v3 }
  0x69   : > { %1182 = vmatpush3.msra.mxu0 %v444_v6 }
  0x6a   : > { %1183 = vmatprep.subr.mxu0 %v1225_v3 }
  0x6b   : > { %1184 = vmatpush3.msra.mxu0 %v443_v7 }
  0xec   : > { %v548_v58 = vpop.f32.mrf.mxu0 }
  0xed   : > { %v554_v59 = vadd.f32 %v548_v58, %v405_v57 }
  0xee   : > { %v1076_v60 = vpop.f32.mrf.mxu0 }
  0xef   : > { %v556_v61 = vpack.c.bf16 %v554_v59, %v554_v59 }
  0xf0   : > { %v551_v62 = vpop.f32.mrf.mxu0 }
  0xf1   : > { %1095 = vmatmul.mubr.bf16.vlgmr.msra.gmra.mxu1 %v556_v61 }
  0xf2   : > { %v1077_v63 = vpop.f32.mrf.mxu0  ;;  %1119 = vmatpush3.msra.mxu1 %v458_v44  ;;  %1150 = vmatprep.mubr.msk.f32.mxu1 %vm1227_vm0, %v1225_v3 }
  0xf3   : > { %1120 = vmatprep.subr.mxu1 %v1225_v3 }
  0xf4   : > { %1121 = vmatpush3.msra.mxu1 %v457_v45 }
  0xf5   : > { %1122 = vmatprep.subr.mxu1 %v1225_v3 }
  0xf6   : > { %1123 = vmatpush3.msra.mxu1 %v456_v46 }
  0xf7   : > { %1124 = vmatprep.subr.mxu1 %v1225_v3 }
  0xf8   : > { %1125 = vmatpush3.msra.mxu1 %v455_v47 }
  0xf9   : > { %1126 = vmatprep.subr.mxu1 %v1225_v3 }
  0xfa   : > { %1127 = vmatpush3.msra.mxu1 %v454_v48 }
  0xfb   : > { %1128 = vmatprep.subr.mxu1 %v1225_v3 }
  0xfc   : > { %1129 = vmatpush3.msra.mxu1 %v453_v49 }
  0xfd   : > { %1130 = vmatprep.subr.mxu1 %v1225_v3 }
  0xfe   : > { %1131 = vmatpush3.msra.mxu1 %v452_v50 }
  0xff   : > { %1132 = vmatprep.subr.mxu1 %v1225_v3 }
 0x100   : > { %1133 = vmatpush3.msra.mxu1 %v451_v51 }
 0x101   : > { %1134 = vmatprep.subr.mxu1 %v1225_v3 }
 0x102   : > { %1135 = vmatpush3.msra.mxu1 %v450_v52 }
 0x103   : > { %1136 = vmatprep.subr.mxu1 %v1225_v3 }
 0x104   : > { %1137 = vmatpush3.msra.mxu1 %v449_v53 }
 0x105   : > { %1138 = vmatprep.subr.mxu1 %v1225_v3 }
 0x106   : > { %1139 = vmatpush3.msra.mxu1 %v448_v54 }
 0x107   : > { %1140 = vmatprep.subr.mxu1 %v1225_v3 }
 0x108   : > { %1141 = vmatpush3.msra.mxu1 %v447_v55 }
 0x109   : > { %1142 = vmatprep.subr.mxu1 %v1225_v3 }
 0x10a   : > { %1143 = vmatpush3.msra.mxu1 %v446_v56 }
 0x10b   : > { %1144 = vmatprep.subr.mxu1 %v1225_v3 }
 0x10c   : > { %v727_v0 = vpop.f32.mrf.mxu0  ;;  %1145 = vmatpush3.msra.mxu1 %v445_v5 }
 0x10d   : > { %1146 = vmatprep.subr.mxu1 %v1225_v3 }
 0x10e   : > { %v1116_v1 = vpop.f32.mrf.mxu0  ;;  %1147 = vmatpush3.msra.mxu1 %v444_v6 }
 0x10f   : > { %1148 = vmatprep.subr.mxu1 %v1225_v3 }
 0x110   : > { %v730_v2 = vpop.f32.mrf.mxu0  ;;  %1149 = vmatpush3.msra.mxu1 %v443_v7 }
 0x112   : > { %v1117_v4 = vpop.f32.mrf.mxu0 }
 0x1b1   : > { %v639_v9 = vpop.f32.mrf.mxu1 }
 0x1b2   : > { %v728_v10 = vadd.f32 %v727_v0, %v639_v9 }
 0x1b3   : > { %v1096_v11 = vpop.f32.mrf.mxu1 }
 0x1b4   : > { %v739_v12 = vadd.f32 %v1008_v8, %v728_v10 }
 0x1b5   : > { %v642_v13 = vpop.f32.mrf.mxu1 }
 0x1b6   : > { %1151 = vmatmul.mubr.f32.vlgmr.msra.gmra.mxu1 %v739_v12 }
 0x1b7   : > { %v1097_v14 = vpop.f32.mrf.mxu1 }
 0x276   : > { %v806_v15 = vpop.f32.mrf.mxu1 }
 0x277   : > { %v810_v16 = vsub.f32 %v739_v12, %v806_v15 }
 0x278   : > { %v1152_v17 = vpop.f32.mrf.mxu1 }
 0x279   : > { %v811_v3 = vmul.f32 %v810_v16, %v810_v16 }
 0x27b   : > { %1186 = vmatmul.mubr.f32.vlgmr.msra.gmra.mxu0 %v811_v3 }
 0x33b   : > { %v878_v18 = vpop.f32.mrf.mxu0 }
 0x33c   : > { %v879_v19 = vadd.f32 1e-05, %v878_v18 }
 0x33d   : > { %v1187_v21 = vpop.f32.mrf.mxu0 }
 0x33e   : > { %1215 = vrsqrt.f32 %v879_v19 }
 0x34b   : > { %v1216_v22 = vpop.eup %1215 }
 0x34c   : > { %v883_v24 = vmul.f32 %v1216_v22, %v810_v16 }
 0x34e   : > { %v890_v26 = vmul.f32 %v1009_v23, %v883_v24 }
 0x350   : > { %v897_v27 = vadd.f32 %v1010_v25, %v890_v26 }
 0x352   : > { %v898_v28 = vmax.f32 %v897_v27, 0.0 }
 0x354   : > { %v899_v29 = vadd.f32 %v898_v28, %v1334_v20 }
 0x356   : > { %900 = vst [vmem:[%s1493_s9] sm:$0xff] %v899_v29 }
 0x357 PF: > { %s19_s30 = sadd.s32 1, %s1223_s30  }
 0x358   : > { %p16_p5 = scmp.ge.s32.totalorder %s19_s30, 8  }
 0x35a   :  { %18 = sbr.rel (!%p16_p5) target bundleno = 1 (0x1), region = 101 }

</bundles_post_ra>
